<compile_context>
chip_gen: v7x
topology: tpu7x:2x2x1
jax: 0.10.0
libtpu: 0.0.40
codegen_flags: <defaults>
</compile_context>

<pallas_src>
import functools
import math

import jax
import jax.numpy as jnp
from jax.experimental import pallas as pl
from jax.experimental.pallas import tpu as pltpu

LOG_2PI = math.log(2.0 * math.pi)

_LANE = 128
_VMEM_BUDGET = 48 << 20      # ~75% of v7x's 64 MiB/TC (smallest generation)
_VMEM_LIMIT_CAP = 64 << 20   # never request more scoped VMEM than v7x has


# ----------------------------------------------------------------------------
# Kernel
# ----------------------------------------------------------------------------
def _csl_kernel(x_ref, wt_mean_ref, wt_logvar_ref, qb_mean_ref, qb_logvar_ref,
                w_samp_ref, b_samp_ref, w_eps_ref, b_eps_ref,      # VMEM inputs
                out_ref, kl_parts_ref,                             # VMEM outputs
                cw1_sc, cw2_sc, cb1_sc, cb2_sc, acc_sc,            # VMEM scratch
                *, n_samples):
    # Grid: (OUT tiles, MC samples).  NOTE: the sample axis MUST stay the
    # innermost, sequential ("arbitrary") axis — out_ref / kl_parts_ref are
    # written only on selected s iterations and rely on output-revisit
    # semantics (block index constant across s).
    s = pl.program_id(1)
    f32 = jnp.float32

    # -------- once per OUT tile: matmuls, output, KL coefficients -----------
    @pl.when(s == 0)
    def _init_tile():
        wt_mean = wt_mean_ref[...]                       # (IN, T) param dtype
        wt_mean_f = wt_mean.astype(f32)
        w_var = 1e-8 + jnp.exp(1.0 + wt_logvar_ref[...].astype(f32))
        w_sigma = jnp.sqrt(w_var)

        qb_mean = qb_mean_ref[...]                       # (1, T) f32
        b_var = 1e-8 + jnp.exp(1.0 + qb_logvar_ref[...])
        b_sigma = jnp.sqrt(b_var)

        x = x_ref[...]                                   # (B, IN) param dtype
        # Two separate MXU dots (no lane-concat temp): identical MXU work,
        # much lower VMEM / store pressure in this heaviest step.
        x_w_mu = jnp.dot(x, wt_mean, preferred_element_type=f32)
        x_w_sigma = jnp.dot(x, w_sigma.astype(x.dtype),
                            preferred_element_type=f32)

        out_ref[...] = (1e-8 + x_w_mu + x_w_sigma * w_samp_ref[...]
                        + qb_mean + b_sigma * b_samp_ref[...])

        # Collapsed MC-KL coefficients (sample independent):
        #   log q - log p = [0.5*mu^2 - 0.5*log(var)]
        #                   + (mu*sigma)*eps + 0.5*(var-1)*eps^2
        cw1_sc[...] = wt_mean_f * w_sigma
        cw2_sc[...] = 0.5 * (w_var - 1.0)
        cb1_sc[...] = qb_mean * b_sigma
        cb2_sc[...] = 0.5 * (b_var - 1.0)

        const_row = (jnp.sum(0.5 * jnp.square(wt_mean_f) - 0.5 * jnp.log(w_var),
                             axis=0, keepdims=True)
                     + 0.5 * jnp.square(qb_mean) - 0.5 * jnp.log(b_var))
        # The constant term appears in every one of the n_samples draws.
        acc_sc[...] = const_row * float(n_samples)

    # -------- every (tile, sample): FMA over streamed eps + sublane reduce --
    eps_w = w_eps_ref[0].astype(f32)                     # (IN, T)
    eps_b = b_eps_ref[0].astype(f32)                     # (1, T)

    contrib = (jnp.sum(cw1_sc[...] * eps_w + cw2_sc[...] * (eps_w * eps_w),
                       axis=0, keepdims=True)
               + cb1_sc[...] * eps_b + cb2_sc[...] * (eps_b * eps_b))
    acc_sc[...] = acc_sc[...] + contrib

    # -------- last sample of this tile: emit lane-dense KL partial row ------
    @pl.when(s == n_samples - 1)
    def _finalize_tile():
        kl_parts_ref[...] = acc_sc[...]


# ----------------------------------------------------------------------------
# VMEM-aware tiling
# ----------------------------------------------------------------------------
def _estimate_vmem_bytes(t_out, *, in_f, batch, p_bytes, e_bytes):
    f32b = 4
    weights = 2 * 2 * in_f * t_out * p_bytes   # qw_mean.T + qw_logvar.T, 2 buffers each
    eps = 2 * in_f * t_out * e_bytes           # w_eps tile, 2 buffers
    coefs = 2 * in_f * t_out * f32b            # cw1 + cw2 scratch
    temps = 3 * in_f * t_out * f32b            # s==0 live temporaries (var / sigma / dot)
    x_res = 2 * batch * in_f * p_bytes         # x resident (double-buffered by default)
    bt = 2 * 3 * batch * t_out * f32b          # w_samples, b_samples, out tiles
    small = 16 * t_out * f32b                  # bias / b_eps / kl blocks + row scratch
    return weights + eps + coefs + temps + x_res + bt + small


def _pick_out_tile(out_pad, in_f, batch, p_bytes, e_bytes):
    """Largest lane-aligned OUT tile that fits the VMEM budget; keep >= 2 tiles
    when possible so v7x's second TensorCore gets work on the parallel axis."""
    for t in (512, 256, 128):
        if out_pad % t:
            continue
        if out_pad >= 2 * _LANE and out_pad // t < 2:
            continue
        if _estimate_vmem_bytes(t, in_f=in_f, batch=batch,
                                p_bytes=p_bytes, e_bytes=e_bytes) <= _VMEM_BUDGET:
            return t
    return _LANE


# ----------------------------------------------------------------------------
# Wrapper
# ----------------------------------------------------------------------------
def complex_stochastic_linear(x, qw_mean, qw_logvar, qb_mean, qb_logvar,
                              w_samples, b_samples, *,
                              kl_key=None, w_eps=None, b_eps=None,
                              n_samples=10,
                              param_dtype=jnp.float32,
                              eps_dtype=jnp.bfloat16):
    """Returns (output (B, OUT), kl_qw_pw scalar) -- module forward(), masks=None.

    w_eps / b_eps: optional explicit N(0,1) MC draws in module layout
    ((NS, OUT, IN) and (NS, OUT)); if omitted they are drawn from `kl_key`
    (in eps_dtype — bf16 by default to halve the streamed KL bytes).
    param_dtype=bf16 ships the two weight matrices (and x) in bf16 with f32
    MXU accumulation; KL math stays f32.
    """
    B, IN = x.shape
    OUT = qw_mean.shape[0]
    f32 = jnp.float32

    # Lane-dense padding of the OUT axis (KL-neutral: mean=0, logvar=-1 => var~1).
    out_pad = max(_LANE, ((OUT + _LANE - 1) // _LANE) * _LANE)
    pad = out_pad - OUT

    p_bytes = jnp.dtype(param_dtype).itemsize
    e_bytes = jnp.dtype(eps_dtype).itemsize
    t_out = _pick_out_tile(out_pad, IN, B, p_bytes, e_bytes)
    num_o = out_pad // t_out

    # Free wrapper-side layout plumbing: weights in (IN, OUT_pad) so the kernel
    # contracts (B,K)x(K,N) directly on the MXU (no in-kernel transpose).
    wt_mean = jnp.pad(jnp.asarray(qw_mean, f32).T,
                      ((0, 0), (0, pad))).astype(param_dtype)
    wt_logvar = jnp.pad(jnp.asarray(qw_logvar, f32).T,
                        ((0, 0), (0, pad)), constant_values=-1.0).astype(param_dtype)
    qb_mean2 = jnp.pad(jnp.asarray(qb_mean, f32).reshape(1, OUT), ((0, 0), (0, pad)))
    qb_logvar2 = jnp.pad(jnp.asarray(qb_logvar, f32).reshape(1, OUT),
                         ((0, 0), (0, pad)), constant_values=-1.0)
    w_samp = jnp.pad(jnp.asarray(w_samples, f32), ((0, 0), (0, pad)))
    b_samp = jnp.pad(jnp.asarray(b_samples, f32), ((0, 0), (0, pad)))
    x_p = jnp.asarray(x, f32).astype(param_dtype)

    # Host-side MC draws (the torch module also samples on the host CPU).
    if w_eps is None or b_eps is None:
        if kl_key is None:
            raise ValueError("provide kl_key or explicit (w_eps, b_eps)")
        kw, kb = jax.random.split(kl_key)
        w_eps_t = jax.random.normal(kw, (n_samples, IN, out_pad), eps_dtype)
        b_eps_t = jax.random.normal(kb, (n_samples, 1, out_pad), eps_dtype)
    else:
        assert w_eps.shape == (n_samples, OUT, IN)
        assert b_eps.shape == (n_samples, OUT)
        w_eps_t = jnp.pad(jnp.transpose(jnp.asarray(w_eps, f32), (0, 2, 1)),
                          ((0, 0), (0, 0), (0, pad))).astype(eps_dtype)
        b_eps_t = jnp.pad(jnp.asarray(b_eps, f32).reshape(n_samples, 1, OUT),
                          ((0, 0), (0, 0), (0, pad))).astype(eps_dtype)

    vmem_need = _estimate_vmem_bytes(t_out, in_f=IN, batch=B,
                                     p_bytes=p_bytes, e_bytes=e_bytes)
    vmem_limit = int(min(max(vmem_need * 5 // 4 + (2 << 20), 32 << 20),
                         _VMEM_LIMIT_CAP))

    grid_spec = pltpu.PrefetchScalarGridSpec(
        num_scalar_prefetch=0,
        grid=(num_o, n_samples),                 # (parallel OUT tiles, MC samples)
        in_specs=[
            pl.BlockSpec((B, IN),        lambda o, s: (0, 0)),    # x (resident)
            pl.BlockSpec((IN, t_out),    lambda o, s: (0, o)),    # qw_mean.T
            pl.BlockSpec((IN, t_out),    lambda o, s: (0, o)),    # qw_logvar.T
            pl.BlockSpec((1, t_out),     lambda o, s: (0, o)),    # qb_mean
            pl.BlockSpec((1, t_out),     lambda o, s: (0, o)),    # qb_logvar
            pl.BlockSpec((B, t_out),     lambda o, s: (0, o)),    # w_samples
            pl.BlockSpec((B, t_out),     lambda o, s: (0, o)),    # b_samples
            pl.BlockSpec((1, IN, t_out), lambda o, s: (s, 0, o)), # w_eps (streamed)
            pl.BlockSpec((1, 1, t_out),  lambda o, s: (s, 0, o)), # b_eps (streamed)
        ],
        out_specs=[
            pl.BlockSpec((B, t_out), lambda o, s: (0, o)),        # output
            pl.BlockSpec((1, t_out), lambda o, s: (0, o)),        # KL partial rows
        ],
        scratch_shapes=[
            pltpu.VMEM((IN, t_out), f32),   # cw1 = mu * sigma
            pltpu.VMEM((IN, t_out), f32),   # cw2 = 0.5 * (var - 1)
            pltpu.VMEM((1, t_out), f32),    # cb1
            pltpu.VMEM((1, t_out), f32),    # cb2
            pltpu.VMEM((1, t_out), f32),    # KL accumulator row
        ],
    )

    cost = pl.CostEstimate(
        flops=int(4 * B * IN * out_pad + 4 * n_samples * IN * out_pad),
        transcendentals=int(3 * IN * out_pad + 3 * out_pad),
        bytes_accessed=int(2 * IN * out_pad * p_bytes
                           + n_samples * IN * out_pad * e_bytes
                           + B * IN * p_bytes + 4 * B * out_pad * 4),
    )

    out, kl_parts = pl.pallas_call(
        functools.partial(_csl_kernel, n_samples=n_samples),
        grid_spec=grid_spec,
        out_shape=(jax.ShapeDtypeStruct((B, out_pad), f32),
                   jax.ShapeDtypeStruct((1, out_pad), f32)),
        compiler_params=pltpu.CompilerParams(
            dimension_semantics=("parallel", "arbitrary"),
            vmem_limit_bytes=vmem_limit),
        cost_estimate=cost,
    )(x_p, wt_mean, wt_logvar, qb_mean2, qb_logvar2, w_samp, b_samp,
      w_eps_t, b_eps_t)

    kl_qw_pw = jnp.sum(kl_parts[:, :OUT]) / n_samples
    return out[:, :OUT], kl_qw_pw


# ----------------------------------------------------------------------------
# Pure-JAX references (for validation only)
# ----------------------------------------------------------------------------
def _reference_output(x, qw_mean, qw_logvar, qb_mean, qb_logvar, w_samples, b_samples):
    qw_sigma = jnp.sqrt(1e-8 + jnp.exp(1.0 + qw_logvar))
    qb_sigma = jnp.sqrt(1e-8 + jnp.exp(1.0 + qb_logvar))
    return (1e-8 + x @ qw_mean.T + (x @ qw_sigma.T) * w_samples
            + qb_mean[None, :] + qb_sigma[None, :] * b_samples)


def _reference_output_bf16(x, qw_mean, qw_logvar, qb_mean, qb_logvar,
                           w_samples, b_samples):
    """Reference matching the kernel's bf16-transport path (bf16-quantized
    x / mean / sigma, f32 accumulation)."""
    f32 = jnp.float32
    xq = x.astype(jnp.bfloat16).astype(f32)
    wq = qw_mean.astype(jnp.bfloat16).astype(f32)
    lvq = qw_logvar.astype(jnp.bfloat16).astype(f32)
    sigq = jnp.sqrt(1e-8 + jnp.exp(1.0 + lvq)).astype(jnp.bfloat16).astype(f32)
    qb_sigma = jnp.sqrt(1e-8 + jnp.exp(1.0 + qb_logvar))
    return (1e-8 + xq @ wq.T + (xq @ sigq.T) * w_samples
            + qb_mean[None, :] + qb_sigma[None, :] * b_samples)


def _kl_mc_original(qw_mean, qw_logvar, qb_mean, qb_logvar, w_eps, b_eps):
    """Literal transcription of get_kl_qw_pw() given explicit eps draws."""
    ns = w_eps.shape[0]
    qw_sigma = jnp.sqrt(1e-8 + jnp.exp(1.0 + qw_logvar))
    qb_sigma = jnp.sqrt(1e-8 + jnp.exp(1.0 + qb_logvar))
    qw_sample = qw_mean[None] + qw_sigma[None] * w_eps
    qb_sample = qb_mean[None] + qb_sigma[None] * b_eps
    log_qw = -0.5 * LOG_2PI - jnp.log(qw_sigma)[None] - 0.5 * jnp.square(w_eps)
    log_pw = -0.5 * LOG_2PI - 0.5 * jnp.square(qw_sample)
    log_qb = -0.5 * LOG_2PI - jnp.log(qb_sigma)[None] - 0.5 * jnp.square(b_eps)
    log_pb = -0.5 * LOG_2PI - 0.5 * jnp.square(qb_sample)
    return (jnp.sum(log_qw - log_pw) + jnp.sum(log_qb - log_pb)) / ns


def _kl_analytic_and_mc_std(qw_mean, qw_logvar, qb_mean, qb_logvar, n_samples):
    """E[KL estimator] (closed form) and its Monte-Carlo standard deviation."""
    w_var = 1e-8 + jnp.exp(1.0 + qw_logvar)
    b_var = 1e-8 + jnp.exp(1.0 + qb_logvar)
    kl_w = 0.5 * (w_var + jnp.square(qw_mean) - 1.0) - 0.5 * jnp.log(w_var)
    kl_b = 0.5 * (b_var + jnp.square(qb_mean) - 1.0) - 0.5 * jnp.log(b_var)
    mean = jnp.sum(kl_w) + jnp.sum(kl_b)
    var = (jnp.sum(jnp.square(qw_mean) * w_var + 0.5 * jnp.square(w_var - 1.0))
           + jnp.sum(jnp.square(qb_mean) * b_var + 0.5 * jnp.square(b_var - 1.0))
           ) / n_samples
    return mean, jnp.sqrt(var)


# ----------------------------------------------------------------------------
if __name__ == "__main__":
    # Small shapes consistent with a Linear layer: batch=8, in=32, out=16.
    B, IN, OUT, NS = 8, 32, 16, 10
    q_logvar_init = -5.0
    stdv = 10.0 / math.sqrt(IN)

    key = jax.random.PRNGKey(0)
    ks = jax.random.split(key, 9)

    # Deterministic parameter init mirroring reset_parameters().
    qw_mean = jax.random.uniform(ks[0], (OUT, IN), jnp.float32, -stdv, stdv)
    qw_logvar = (jax.random.uniform(ks[1], (OUT, IN), jnp.float32, -stdv, stdv)
                 + q_logvar_init)
    qb_mean = jax.random.uniform(ks[2], (OUT,), jnp.float32, -stdv, stdv)
    qb_logvar = (jax.random.uniform(ks[3], (OUT,), jnp.float32, -stdv, stdv)
                 + q_logvar_init)
    # log_alpha is initialized by the module but unused in forward().

    x = jax.random.normal(ks[4], (B, IN), jnp.float32)
    # Output-noise draws of the forward pass (torch.randn equivalents).
    w_samples = jax.random.normal(ks[5], (B, OUT), jnp.float32)
    b_samples = jax.random.normal(ks[6], (B, OUT), jnp.float32)
    # Explicit MC eps in the module's layout so the KL can be checked exactly.
    w_eps = jax.random.normal(ks[7], (NS, OUT, IN), jnp.float32)
    b_eps = jax.random.normal(ks[8], (NS, OUT), jnp.float32)

    # ---- run 1: f32 transport + explicit f32 eps -> tight checks ------------
    out, kl = complex_stochastic_linear(
        x, qw_mean, qw_logvar, qb_mean, qb_logvar, w_samples, b_samples,
        w_eps=w_eps, b_eps=b_eps, n_samples=NS,
        param_dtype=jnp.float32, eps_dtype=jnp.float32)
    out, kl = jax.block_until_ready((out, kl))
    assert out.shape == (B, OUT)

    out_ref = _reference_output(x, qw_mean, qw_logvar, qb_mean, qb_logvar,
                                w_samples, b_samples)
    # Tolerance covers MXU-vs-XLA default matmul precision differences on TPU.
    assert bool(jnp.allclose(out, out_ref, atol=5e-2, rtol=5e-3))

    kl_ref = _kl_mc_original(qw_mean, qw_logvar, qb_mean, qb_logvar, w_eps, b_eps)
    assert bool(jnp.abs(kl - kl_ref) < 0.5 + 1e-3 * jnp.abs(kl_ref))

    # ---- run 2: default production path (bf16 eps drawn from a key) --------
    out2, kl2 = complex_stochastic_linear(
        x, qw_mean, qw_logvar, qb_mean, qb_logvar, w_samples, b_samples,
        kl_key=jax.random.PRNGKey(7), n_samples=NS)
    out2, kl2 = jax.block_until_ready((out2, kl2))
    assert bool(jnp.allclose(out2, out_ref, atol=5e-2, rtol=5e-3))
    kl_mean, kl_std = _kl_analytic_and_mc_std(qw_mean, qw_logvar, qb_mean,
                                              qb_logvar, NS)
    assert bool(jnp.isfinite(kl2))
    assert bool(jnp.abs(kl2 - kl_mean) < 10.0 * kl_std + 1.0)

    # ---- run 3: bf16 weight/activation transport, f32 accumulation ---------
    out3, kl3 = complex_stochastic_linear(
        x, qw_mean, qw_logvar, qb_mean, qb_logvar, w_samples, b_samples,
        w_eps=w_eps, b_eps=b_eps, n_samples=NS,
        param_dtype=jnp.bfloat16, eps_dtype=jnp.float32)
    out3, kl3 = jax.block_until_ready((out3, kl3))
    out_ref_q = _reference_output_bf16(x, qw_mean, qw_logvar, qb_mean, qb_logvar,
                                       w_samples, b_samples)
    assert bool(jnp.allclose(out3, out_ref_q, atol=5e-2, rtol=1e-2))
    assert bool(jnp.abs(kl3 - kl_ref) < 0.03 * jnp.abs(kl_ref) + 2.0)

    print("KERNEL_OK")
</pallas_src>

<mosaic_0001>
module attributes {stable_mosaic.version = 11 : i64} {
  func.func @_csl_kernel(%arg0: i32, %arg1: i32, %arg2: memref<8x32xf32, #tpu.memory_space<vmem>>, %arg3: memref<32x128xf32, #tpu.memory_space<vmem>>, %arg4: memref<32x128xf32, #tpu.memory_space<vmem>>, %arg5: memref<1x128xf32, #tpu.memory_space<vmem>>, %arg6: memref<1x128xf32, #tpu.memory_space<vmem>>, %arg7: memref<8x128xf32, #tpu.memory_space<vmem>>, %arg8: memref<8x128xf32, #tpu.memory_space<vmem>>, %arg9: memref<1x32x128xf32, #tpu.memory_space<vmem>>, %arg10: memref<1x1x128xf32, #tpu.memory_space<vmem>>, %arg11: memref<8x128xf32, #tpu.memory_space<vmem>>, %arg12: memref<1x128xf32, #tpu.memory_space<vmem>>, %arg13: memref<32x128xf32, #tpu.memory_space<vmem>>, %arg14: memref<32x128xf32, #tpu.memory_space<vmem>>, %arg15: memref<1x128xf32, #tpu.memory_space<vmem>>, %arg16: memref<1x128xf32, #tpu.memory_space<vmem>>, %arg17: memref<1x128xf32, #tpu.memory_space<vmem>>) attributes {dimension_semantics = [#tpu.dimension_semantics<parallel>, #tpu.dimension_semantics<arbitrary>], iteration_bounds = array<i64: 1, 10>, scalar_prefetch = 0 : i64, scratch_operands = 5 : i64, tpu.core_type = #tpu.core_type<tc>, window_params = [{pipeline_mode = #tpu.pipeline_mode<synchronous>, transform_indices = @transform_0, window_bounds = array<i64: 8, 32>}, {transform_indices = @transform_1, window_bounds = array<i64: 32, 128>}, {transform_indices = @transform_2, window_bounds = array<i64: 32, 128>}, {transform_indices = @transform_3, window_bounds = array<i64: 1, 128>}, {transform_indices = @transform_4, window_bounds = array<i64: 1, 128>}, {transform_indices = @transform_5, window_bounds = array<i64: 8, 128>}, {transform_indices = @transform_6, window_bounds = array<i64: 8, 128>}, {transform_indices = @transform_7, window_bounds = array<i64: 1, 32, 128>}, {transform_indices = @transform_8, window_bounds = array<i64: 1, 1, 128>}, {transform_indices = @transform_9, window_bounds = array<i64: 8, 128>}, {transform_indices = @transform_10, window_bounds = array<i64: 1, 128>}]} {
    %c0_i32 = arith.constant 0 : i32
    %0 = arith.cmpi eq, %arg1, %c0_i32 : i32
    %1 = arith.extui %0 : i1 to i32
    %c0_i32_0 = arith.constant 0 : i32
    %2 = arith.cmpi ne, %1, %c0_i32_0 : i32
    scf.if %2 {
      %c0_19 = arith.constant 0 : index
      %c0_20 = arith.constant 0 : index
      %28 = vector.load %arg3[%c0_19, %c0_20] : memref<32x128xf32, #tpu.memory_space<vmem>>, vector<32x128xf32>
      %c0_21 = arith.constant 0 : index
      %c0_22 = arith.constant 0 : index
      %29 = vector.load %arg4[%c0_21, %c0_22] : memref<32x128xf32, #tpu.memory_space<vmem>>, vector<32x128xf32>
      %cst_23 = arith.constant 1.000000e+00 : f32
      %30 = vector.broadcast %cst_23 : f32 to vector<32x128xf32>
      %31 = arith.addf %30, %29 : vector<32x128xf32>
      %32 = math.exp %31 : vector<32x128xf32>
      %cst_24 = arith.constant 9.99999993E-9 : f32
      %33 = vector.broadcast %cst_24 : f32 to vector<32x128xf32>
      %34 = arith.addf %33, %32 : vector<32x128xf32>
      %35 = math.sqrt %34 : vector<32x128xf32>
      %c0_25 = arith.constant 0 : index
      %c0_26 = arith.constant 0 : index
      %36 = vector.load %arg5[%c0_25, %c0_26] : memref<1x128xf32, #tpu.memory_space<vmem>>, vector<1x128xf32>
      %c0_27 = arith.constant 0 : index
      %c0_28 = arith.constant 0 : index
      %37 = vector.load %arg6[%c0_27, %c0_28] : memref<1x128xf32, #tpu.memory_space<vmem>>, vector<1x128xf32>
      %cst_29 = arith.constant 1.000000e+00 : f32
      %38 = vector.broadcast %cst_29 : f32 to vector<1x128xf32>
      %39 = arith.addf %38, %37 : vector<1x128xf32>
      %40 = math.exp %39 : vector<1x128xf32>
      %cst_30 = arith.constant 9.99999993E-9 : f32
      %41 = vector.broadcast %cst_30 : f32 to vector<1x128xf32>
      %42 = arith.addf %41, %40 : vector<1x128xf32>
      %43 = math.sqrt %42 : vector<1x128xf32>
      %c0_31 = arith.constant 0 : index
      %c0_32 = arith.constant 0 : index
      %44 = vector.load %arg2[%c0_31, %c0_32] : memref<8x32xf32, #tpu.memory_space<vmem>>, vector<8x32xf32>
      %cst_33 = arith.constant dense<0.000000e+00> : vector<8x128xf32>
      %45 = tpu.matmul %44, %28, %cst_33 {dimension_numbers = #tpu.dot_dimension_numbers<[1], [0], [0], [1], [0, 0, 1, 1], [], []>} : vector<8x32xf32>, vector<32x128xf32>, vector<8x128xf32> -> vector<8x128xf32>
      %cst_34 = arith.constant dense<0.000000e+00> : vector<8x128xf32>
      %46 = tpu.matmul %44, %35, %cst_34 {dimension_numbers = #tpu.dot_dimension_numbers<[1], [0], [0], [1], [0, 0, 1, 1], [], []>} : vector<8x32xf32>, vector<32x128xf32>, vector<8x128xf32> -> vector<8x128xf32>
      %cst_35 = arith.constant 9.99999993E-9 : f32
      %47 = vector.broadcast %cst_35 : f32 to vector<8x128xf32>
      %48 = arith.addf %47, %45 : vector<8x128xf32>
      %c0_36 = arith.constant 0 : index
      %c0_37 = arith.constant 0 : index
      %49 = vector.load %arg7[%c0_36, %c0_37] : memref<8x128xf32, #tpu.memory_space<vmem>>, vector<8x128xf32>
      %50 = arith.mulf %46, %49 : vector<8x128xf32>
      %51 = arith.addf %48, %50 : vector<8x128xf32>
      %52 = vector.broadcast %36 : vector<1x128xf32> to vector<8x128xf32>
      %53 = arith.addf %51, %52 : vector<8x128xf32>
      %c0_38 = arith.constant 0 : index
      %c0_39 = arith.constant 0 : index
      %54 = vector.load %arg8[%c0_38, %c0_39] : memref<8x128xf32, #tpu.memory_space<vmem>>, vector<8x128xf32>
      %55 = vector.broadcast %43 : vector<1x128xf32> to vector<8x128xf32>
      %56 = arith.mulf %55, %54 : vector<8x128xf32>
      %57 = arith.addf %53, %56 : vector<8x128xf32>
      %c0_40 = arith.constant 0 : index
      %c0_41 = arith.constant 0 : index
      %58 = vector.load %arg11[%c0_40, %c0_41] : memref<8x128xf32, #tpu.memory_space<vmem>>, vector<8x128xf32>
      tpu.vector_store %arg11[%c0_40, %c0_41], %57 {strides = array<i32>} : memref<8x128xf32, #tpu.memory_space<vmem>>, vector<8x128xf32>,
      %59 = arith.mulf %28, %35 : vector<32x128xf32>
      %c0_42 = arith.constant 0 : index
      %c0_43 = arith.constant 0 : index
      %60 = vector.load %arg13[%c0_42, %c0_43] : memref<32x128xf32, #tpu.memory_space<vmem>>, vector<32x128xf32>
      tpu.vector_store %arg13[%c0_42, %c0_43], %59 {strides = array<i32>} : memref<32x128xf32, #tpu.memory_space<vmem>>, vector<32x128xf32>,
      %cst_44 = arith.constant 1.000000e+00 : f32
      %61 = vector.broadcast %cst_44 : f32 to vector<32x128xf32>
      %62 = arith.subf %34, %61 : vector<32x128xf32>
      %cst_45 = arith.constant 5.000000e-01 : f32
      %63 = vector.broadcast %cst_45 : f32 to vector<32x128xf32>
      %64 = arith.mulf %63, %62 : vector<32x128xf32>
      %c0_46 = arith.constant 0 : index
      %c0_47 = arith.constant 0 : index
      %65 = vector.load %arg14[%c0_46, %c0_47] : memref<32x128xf32, #tpu.memory_space<vmem>>, vector<32x128xf32>
      tpu.vector_store %arg14[%c0_46, %c0_47], %64 {strides = array<i32>} : memref<32x128xf32, #tpu.memory_space<vmem>>, vector<32x128xf32>,
      %66 = arith.mulf %36, %43 : vector<1x128xf32>
      %c0_48 = arith.constant 0 : index
      %c0_49 = arith.constant 0 : index
      %67 = vector.load %arg15[%c0_48, %c0_49] : memref<1x128xf32, #tpu.memory_space<vmem>>, vector<1x128xf32>
      tpu.vector_store %arg15[%c0_48, %c0_49], %66 {strides = array<i32>} : memref<1x128xf32, #tpu.memory_space<vmem>>, vector<1x128xf32>,
      %cst_50 = arith.constant 1.000000e+00 : f32
      %68 = vector.broadcast %cst_50 : f32 to vector<1x128xf32>
      %69 = arith.subf %42, %68 : vector<1x128xf32>
      %cst_51 = arith.constant 5.000000e-01 : f32
      %70 = vector.broadcast %cst_51 : f32 to vector<1x128xf32>
      %71 = arith.mulf %70, %69 : vector<1x128xf32>
      %c0_52 = arith.constant 0 : index
      %c0_53 = arith.constant 0 : index
      %72 = vector.load %arg16[%c0_52, %c0_53] : memref<1x128xf32, #tpu.memory_space<vmem>>, vector<1x128xf32>
      tpu.vector_store %arg16[%c0_52, %c0_53], %71 {strides = array<i32>} : memref<1x128xf32, #tpu.memory_space<vmem>>, vector<1x128xf32>,
      %73 = arith.mulf %28, %28 : vector<32x128xf32>
      %cst_54 = arith.constant 5.000000e-01 : f32
      %74 = vector.broadcast %cst_54 : f32 to vector<32x128xf32>
      %75 = arith.mulf %74, %73 : vector<32x128xf32>
      %76 = math.log %34 : vector<32x128xf32>
      %cst_55 = arith.constant 5.000000e-01 : f32
      %77 = vector.broadcast %cst_55 : f32 to vector<32x128xf32>
      %78 = arith.mulf %77, %76 : vector<32x128xf32>
      %79 = arith.subf %75, %78 : vector<32x128xf32>
      %cst_56 = arith.constant dense<0.000000e+00> : vector<128xf32>
      %80 = vector.multi_reduction <add>, %79, %cst_56 [0] : vector<32x128xf32> to vector<128xf32>
      %81 = vector.shape_cast %80 : vector<128xf32> to vector<1x128xf32>
      %82 = arith.mulf %36, %36 : vector<1x128xf32>
      %cst_57 = arith.constant 5.000000e-01 : f32
      %83 = vector.broadcast %cst_57 : f32 to vector<1x128xf32>
      %84 = arith.mulf %83, %82 : vector<1x128xf32>
      %85 = arith.addf %81, %84 : vector<1x128xf32>
      %86 = math.log %42 : vector<1x128xf32>
      %cst_58 = arith.constant 5.000000e-01 : f32
      %87 = vector.broadcast %cst_58 : f32 to vector<1x128xf32>
      %88 = arith.mulf %87, %86 : vector<1x128xf32>
      %89 = arith.subf %85, %88 : vector<1x128xf32>
      %cst_59 = arith.constant 1.000000e+01 : f32
      %90 = vector.broadcast %cst_59 : f32 to vector<1x128xf32>
      %91 = arith.mulf %89, %90 : vector<1x128xf32>
      %c0_60 = arith.constant 0 : index
      %c0_61 = arith.constant 0 : index
      %92 = vector.load %arg17[%c0_60, %c0_61] : memref<1x128xf32, #tpu.memory_space<vmem>>, vector<1x128xf32>
      tpu.vector_store %arg17[%c0_60, %c0_61], %91 {strides = array<i32>} : memref<1x128xf32, #tpu.memory_space<vmem>>, vector<1x128xf32>,
    } else {
    }
    %c0 = arith.constant 0 : index
    %c0_1 = arith.constant 0 : index
    %c0_2 = arith.constant 0 : index
    %3 = vector.load %arg9[%c0, %c0_1, %c0_2] : memref<1x32x128xf32, #tpu.memory_space<vmem>>, vector<1x32x128xf32>
    %4 = vector.shape_cast %3 : vector<1x32x128xf32> to vector<32x128xf32>
    %c0_3 = arith.constant 0 : index
    %c0_4 = arith.constant 0 : index
    %c0_5 = arith.constant 0 : index
    %5 = vector.load %arg10[%c0_3, %c0_4, %c0_5] : memref<1x1x128xf32, #tpu.memory_space<vmem>>, vector<1x1x128xf32>
    %6 = vector.shape_cast %5 : vector<1x1x128xf32> to vector<1x128xf32>
    %c0_6 = arith.constant 0 : index
    %c0_7 = arith.constant 0 : index
    %7 = vector.load %arg13[%c0_6, %c0_7] : memref<32x128xf32, #tpu.memory_space<vmem>>, vector<32x128xf32>
    %8 = arith.mulf %7, %4 : vector<32x128xf32>
    %c0_8 = arith.constant 0 : index
    %c0_9 = arith.constant 0 : index
    %9 = vector.load %arg14[%c0_8, %c0_9] : memref<32x128xf32, #tpu.memory_space<vmem>>, vector<32x128xf32>
    %10 = arith.mulf %4, %4 : vector<32x128xf32>
    %11 = arith.mulf %9, %10 : vector<32x128xf32>
    %12 = arith.addf %8, %11 : vector<32x128xf32>
    %cst = arith.constant dense<0.000000e+00> : vector<128xf32>
    %13 = vector.multi_reduction <add>, %12, %cst [0] : vector<32x128xf32> to vector<128xf32>
    %14 = vector.shape_cast %13 : vector<128xf32> to vector<1x128xf32>
    %c0_10 = arith.constant 0 : index
    %c0_11 = arith.constant 0 : index
    %15 = vector.load %arg15[%c0_10, %c0_11] : memref<1x128xf32, #tpu.memory_space<vmem>>, vector<1x128xf32>
    %16 = arith.mulf %15, %6 : vector<1x128xf32>
    %17 = arith.addf %14, %16 : vector<1x128xf32>
    %c0_12 = arith.constant 0 : index
    %c0_13 = arith.constant 0 : index
    %18 = vector.load %arg16[%c0_12, %c0_13] : memref<1x128xf32, #tpu.memory_space<vmem>>, vector<1x128xf32>
    %19 = arith.mulf %6, %6 : vector<1x128xf32>
    %20 = arith.mulf %18, %19 : vector<1x128xf32>
    %21 = arith.addf %17, %20 : vector<1x128xf32>
    %c0_14 = arith.constant 0 : index
    %c0_15 = arith.constant 0 : index
    %22 = vector.load %arg17[%c0_14, %c0_15] : memref<1x128xf32, #tpu.memory_space<vmem>>, vector<1x128xf32>
    %23 = arith.addf %22, %21 : vector<1x128xf32>
    %c0_16 = arith.constant 0 : index
    %c0_17 = arith.constant 0 : index
    %24 = vector.load %arg17[%c0_16, %c0_17] : memref<1x128xf32, #tpu.memory_space<vmem>>, vector<1x128xf32>
    tpu.vector_store %arg17[%c0_16, %c0_17], %23 {strides = array<i32>} : memref<1x128xf32, #tpu.memory_space<vmem>>, vector<1x128xf32>,
    %c9_i32 = arith.constant 9 : i32
    %25 = arith.cmpi eq, %arg1, %c9_i32 : i32
    %26 = arith.extui %25 : i1 to i32
    %c0_i32_18 = arith.constant 0 : i32
    %27 = arith.cmpi ne, %26, %c0_i32_18 : i32
    scf.if %27 {
      %c0_19 = arith.constant 0 : index
      %c0_20 = arith.constant 0 : index
      %28 = vector.load %arg17[%c0_19, %c0_20] : memref<1x128xf32, #tpu.memory_space<vmem>>, vector<1x128xf32>
      %c0_21 = arith.constant 0 : index
      %c0_22 = arith.constant 0 : index
      %29 = vector.load %arg12[%c0_21, %c0_22] : memref<1x128xf32, #tpu.memory_space<vmem>>, vector<1x128xf32>
      tpu.vector_store %arg12[%c0_21, %c0_22], %28 {strides = array<i32>} : memref<1x128xf32, #tpu.memory_space<vmem>>, vector<1x128xf32>,
    } else {
    }
    return
  }
  func.func @transform_0(%arg0: i32, %arg1: i32) -> (i32, i32) {
    %c0_i32 = arith.constant 0 : i32
    %c0_i32_0 = arith.constant 0 : i32
    %c0_i32_1 = arith.constant 0 : i32
    return %c0_i32, %c0_i32_0 : i32, i32
  }
  func.func @transform_1(%arg0: i32, %arg1: i32) -> (i32, i32) {
    %c0_i32 = arith.constant 0 : i32
    %c0_i32_0 = arith.constant 0 : i32
    return %c0_i32, %arg0 : i32, i32
  }
  func.func @transform_2(%arg0: i32, %arg1: i32) -> (i32, i32) {
    %c0_i32 = arith.constant 0 : i32
    %c0_i32_0 = arith.constant 0 : i32
    return %c0_i32, %arg0 : i32, i32
  }
  func.func @transform_3(%arg0: i32, %arg1: i32) -> (i32, i32) {
    %c0_i32 = arith.constant 0 : i32
    %c0_i32_0 = arith.constant 0 : i32
    return %c0_i32, %arg0 : i32, i32
  }
  func.func @transform_4(%arg0: i32, %arg1: i32) -> (i32, i32) {
    %c0_i32 = arith.constant 0 : i32
    %c0_i32_0 = arith.constant 0 : i32
    return %c0_i32, %arg0 : i32, i32
  }
  func.func @transform_5(%arg0: i32, %arg1: i32) -> (i32, i32) {
    %c0_i32 = arith.constant 0 : i32
    %c0_i32_0 = arith.constant 0 : i32
    return %c0_i32, %arg0 : i32, i32
  }
  func.func @transform_6(%arg0: i32, %arg1: i32) -> (i32, i32) {
    %c0_i32 = arith.constant 0 : i32
    %c0_i32_0 = arith.constant 0 : i32
    return %c0_i32, %arg0 : i32, i32
  }
  func.func @transform_7(%arg0: i32, %arg1: i32) -> (i32, i32, i32) {
    %c0_i32 = arith.constant 0 : i32
    %c0_i32_0 = arith.constant 0 : i32
    return %arg1, %c0_i32, %arg0 : i32, i32, i32
  }
  func.func @transform_8(%arg0: i32, %arg1: i32) -> (i32, i32, i32) {
    %c0_i32 = arith.constant 0 : i32
    %c0_i32_0 = arith.constant 0 : i32
    return %arg1, %c0_i32, %arg0 : i32, i32, i32
  }
  func.func @transform_9(%arg0: i32, %arg1: i32) -> (i32, i32) {
    %c0_i32 = arith.constant 0 : i32
    %c0_i32_0 = arith.constant 0 : i32
    return %c0_i32, %arg0 : i32, i32
  }
  func.func @transform_10(%arg0: i32, %arg1: i32) -> (i32, i32) {
    %c0_i32 = arith.constant 0 : i32
    %c0_i32_0 = arith.constant 0 : i32
    return %c0_i32, %arg0 : i32, i32
  }
}

</mosaic_0001>

<bundles_post_ra>
// kernel: tpu_custom_call.1
= control target key start
LH: loop header
LB: loop body
LE: loop exit
PB: predicated region body
PF: predicated region fallthrough
CT: control target
= control target key end

     0   :  { %s2177_s0 = inlined_call_operand.hbm [shape: f32[8,32], index: 0, kind: input, shape index: {}]   ;;  %s2178_s1 = inlined_call_operand.hbm [shape: f32[32,128], index: 1, kind: input, shape index: {}]   ;;  %s2179_s2 = inlined_call_operand.hbm [shape: f32[32,128], index: 2, kind: input, shape index: {}]   ;;  %s2180_s3 = inlined_call_operand.hbm [shape: f32[1,128], index: 3, kind: input, shape index: {}]   ;;  %s2181_s4 = inlined_call_operand.hbm [shape: f32[1,128], index: 4, kind: input, shape index: {}]   ;;  %s2182_s5 = inlined_call_operand.vmem [shape: f32[8,128], index: 5, kind: input, shape index: {}]   ;;  %s2183_s6 = inlined_call_operand.hbm [shape: f32[8,128], index: 6, kind: input, shape index: {}]   ;;  %s2184_s7 = inlined_call_operand.hbm [shape: f32[10,32,128], index: 7, kind: input, shape index: {}]   ;;  %s2185_s8 = inlined_call_operand.vmem [shape: f32[10,1,128], index: 8, kind: input, shape index: {}]   ;;  %s2186_s9 = inlined_call_operand.hbm [shape: f32[8,128], index: 9, kind: output, shape index: {0}]   ;;  %s2187_s10 = inlined_call_operand.hbm [shape: f32[1,128], index: 10, kind: output, shape index: {1}]  }
   0x1   :  { %2196 = sst [smem:[#allocation29_spill]] %s2177_s0 }
   0x2   :  { %2197 = sst [smem:[#allocation30_spill]] %s2178_s1 }
   0x3   :  { %2198 = sst [smem:[#allocation31_spill]] %s2186_s9 }
   0x4   :  { %2199 = sst [smem:[#allocation32_spill]] %s2187_s10 }
   0x5   :  { %16 = vsyncpa [#allocation8], 0 }
   0x6   :  { %17 = vsyncpa [#allocation11], 0 }
   0x7   :  { %18 = vsyncpa [#allocation14], 0 }
   0x8   :  { %19 = vsyncpa [#allocation17], 0 }
   0x9   :  { %20 = vsyncpa [#allocation9], 0 }
   0xa   :  { %21 = vsyncpa [#allocation21], 0  ;;  %s1732_s13 = smov 0   ;;  %s1734_s14 = smov 0  }
   0xb   :  { %s1736_s15 = smov 0   ;;  %s1738_s16 = smov 0  }
   0xc   :  { %s1740_s17 = smov 0   ;;  %s1742_s18 = smov 0  }
   0xd LB: > { %s1763_s19 = sadd.s32 4294967295, %s1661_s18   ;;  %p1092_p0 = scmp.ge.s32.totalorder %s1661_s18, 1  ;;  %s1661_s18 = sphi %s1742_s18, %s27_s18   ;;  %s1657_s17 = sphi %s1740_s17, %s2226_s17   ;;  %s1653_s16 = sphi %s1738_s16, %s2225_s16   ;;  %s1649_s15 = sphi %s1736_s15, %s2224_s15   ;;  %s1645_s14 = sphi %s1734_s14, %s2223_s14   ;;  %s1641_s13 = sphi %s1732_s13, %s2222_s13  }
   0xe   : > { %p2188_p1 = scmp.eq.s32.totalorder %s1763_s19, 0  ;;  %p329_p2 = scmp.lt.s32.totalorder %s1661_s18, 11 }
   0xf   : > { %s1663_s21 = smov [#allocation7]   ;;  %s1664_s23 = smov [#allocation10]  }
  0x10   : > { %p1768_p3 = pnand %p1092_p0, %p329_p2  ;;  %s342_s22 = sshll.u32 %s1663_s21, 4  ;;  %s343_s22 = int_to_ptr.vmem [resolvable:$true] %s342_s22 }
  0x11   : > { %s354_s24 = sshll.u32 %s1664_s23, 4  ;;  %s1665_s26 = smov [#allocation13]   ;;  %s1780_s24 = int_to_ptr.vmem [resolvable:$true] %s354_s24 }
  0x12   : > { %s2200_s20 = scalar_select %p1768_p3, 1, 0 }
  0x13   : > { %p1206_p4 = pneg %p1768_p3  ;;  %s1782_s27 = sshll.u32 %s1665_s26, 4  ;;  %s386_s27 = int_to_ptr.vmem [resolvable:$true] %s1782_s27 }
  0x14   : > { %s2202_s0 = sld [smem:[#allocation29_spill]] }
  0x15   : > { %p1776_p5 = pnand %p1206_p4, %p2188_p1 }
  0x17   : > { %p1792_p7 = pneg %p1776_p5 }
  0x1a   : > { %s1337_s30 = scalar_lea.hbm %s2202_s0, 128 }
  0x1b   : > { %p1338_p6 = scmp.ne.s32.totalorder %s2202_s0, %s1337_s30  ;;  %p1344_p10 = scmp.lt.u32.totalorder %s1337_s30, %s2202_s0 }
  0x1d   : > { %p1340_p8 = pnand %p1792_p7, %p1338_p6 }
  0x1f   : > { %p1341_p9 = pneg %p1340_p8 }
  0x21   : > { %p1346_p11 = pnand %p1344_p10, %p1341_p9 }
  0x23   : > { %1349 = shalt.err (!%p1346_p11)
}
  0x24   : > { %s1350_s28 = scalar_lea.vmem %s343_s22, 128  ;;  %p1358_p2 = scmp.lt.s32.totalorder %s343_s22, %s343_s22 }
  0x25   : > { %p1351_p12 = scmp.ne.s32.totalorder %s343_s22, %s1350_s28  ;;  %p1359_p4 = scmp.lt.s32.totalorder %s1350_s28, %s1350_s28 }
  0x27   : > { %p1353_p13 = pnand %p1351_p12, %p1792_p7  ;;  %p1360_p1 = por %p1359_p4, %p1358_p2 }
  0x29   : > { %p1354_p0 = pneg %p1353_p13 }
  0x2b   : > { %p1361_p3 = pnand %p1360_p1, %p1354_p0 }
  0x2d   : > { %1364 = shalt.err (!%p1361_p3)
}
  0x2e   : > { %1209 = dma.hbm_to_vmem [thread:$0]  (!%p1776_p5), %s2202_s0, 128, %s343_s22, [#allocation8]  }
  0x2f   : > { %s2204_s1 = sld [smem:[#allocation30_spill]] }
  0x35   : > { %s1365_s23 = scalar_lea.hbm %s2204_s1, 512 }
  0x36   : > { %p1366_p6 = scmp.ne.s32.totalorder %s2204_s1, %s1365_s23  ;;  %p1372_p1 = scmp.lt.u32.totalorder %s1365_s23, %s2204_s1 }
  0x38   : > { %p1368_p8 = pnand %p1366_p6, %p1792_p7 }
  0x3a   : > { %p1369_p9 = pneg %p1368_p8 }
  0x3c   : > { %p1374_p3 = pnand %p1372_p1, %p1369_p9 }
  0x3e   : > { %1377 = shalt.err (!%p1374_p3)
}
  0x3f   : > { %s1378_s22 = scalar_lea.vmem %s1780_s24, 512  ;;  %p1386_p13 = scmp.lt.s32.totalorder %s1780_s24, %s1780_s24 }
  0x40   : > { %p1379_p10 = scmp.ne.s32.totalorder %s1780_s24, %s1378_s22  ;;  %p1387_p0 = scmp.lt.s32.totalorder %s1378_s22, %s1378_s22 }
  0x42   : > { %p1381_p11 = pnand %p1379_p10, %p1792_p7  ;;  %p1388_p2 = por %p1387_p0, %p1386_p13 }
  0x44   : > { %p1382_p12 = pneg %p1381_p11 }
  0x46   : > { %p1389_p4 = pnand %p1388_p2, %p1382_p12 }
  0x48   : > { %1392 = shalt.err (!%p1389_p4)
}
  0x49   : > { %s2192_s10 = smov 128   ;;  %s2194_s9 = smov 8  }
  0x4a   : > { %1212 = dma.hbm_to_vmem [thread:$0]  (!%p1776_p5), %s2204_s1, 512, %s1780_s24, [#allocation11], %s2192_s10, %s2192_s10, %s2194_s9  }
  0x4b   : > { %s1393_s23 = scalar_lea.hbm %s2180_s3, 16 }
  0x4c   : > { %p1394_p6 = scmp.ne.s32.totalorder %s2180_s3, %s1393_s23  ;;  %p1400_p1 = scmp.lt.u32.totalorder %s1393_s23, %s2180_s3 }
  0x4e   : > { %p1396_p8 = pnand %p1394_p6, %p1792_p7 }
  0x50   : > { %p1397_p9 = pneg %p1396_p8 }
  0x52   : > { %p1402_p3 = pnand %p1400_p1, %p1397_p9 }
  0x54   : > { %1405 = shalt.err (!%p1402_p3)
}
  0x55   : > { %s1406_s29 = scalar_lea.vmem %s386_s27, 16  ;;  %s1413_s24 = scalar_lea.vmem %s386_s27, 32 }
  0x56   : > { %p1407_p10 = scmp.ne.s32.totalorder %s386_s27, %s1406_s29  ;;  %p1414_p13 = scmp.lt.s32.totalorder %s386_s27, %s386_s27 }
  0x57   : > { %p1415_p0 = scmp.lt.s32.totalorder %s1413_s24, %s1406_s29 }
  0x58   : > { %p1409_p11 = pnand %p1407_p10, %p1792_p7 }
  0x59   : > { %p1416_p2 = por %p1415_p0, %p1414_p13 }
  0x5a   : > { %p1410_p12 = pneg %p1409_p11 }
  0x5c   : > { %p1417_p4 = pnand %p1416_p2, %p1410_p12 }
  0x5e   : > { %1420 = shalt.err (!%p1417_p4)
}
  0x5f   : > { %1218 = dma.hbm_to_vmem [thread:$0]  (!%p1776_p5), %s2180_s3, 16, %s386_s27, [#allocation14]  }
  0x60   : > { %s1668_s0 = smov [#allocation12]   ;;  %s1669_s23 = smov [#allocation15]  }
  0x61   : > { %s369_s12 = sshll.u32 %s1668_s0, 4  ;;  %s398_s26 = sshll.u32 %s1669_s23, 4  ;;  %s370_s12 = int_to_ptr.vmem [resolvable:$true] %s369_s12  ;;  %s399_s26 = int_to_ptr.vmem [resolvable:$true] %s398_s26 }
  0x62   : > { %s1421_s10 = scalar_lea.hbm %s2179_s2, 512 }
  0x63   : > { %p1422_p6 = scmp.ne.s32.totalorder %s2179_s2, %s1421_s10  ;;  %p1428_p1 = scmp.lt.u32.totalorder %s1421_s10, %s2179_s2 }
  0x65   : > { %p1424_p8 = pnand %p1422_p6, %p1792_p7 }
  0x67   : > { %p1425_p9 = pneg %p1424_p8 }
  0x69   : > { %p1430_p3 = pnand %p1428_p1, %p1425_p9 }
  0x6b   : > { %1433 = shalt.err (!%p1430_p3)
}
  0x6c   : > { %s1434_s27 = scalar_lea.vmem %s370_s12, 512  ;;  %p1442_p13 = scmp.lt.s32.totalorder %s370_s12, %s370_s12 }
  0x6d   : > { %p1435_p10 = scmp.ne.s32.totalorder %s370_s12, %s1434_s27  ;;  %p1443_p0 = scmp.lt.s32.totalorder %s1434_s27, %s1434_s27 }
  0x6f   : > { %p1437_p11 = pnand %p1435_p10, %p1792_p7  ;;  %p1444_p2 = por %p1443_p0, %p1442_p13 }
  0x71   : > { %p1438_p12 = pneg %p1437_p11 }
  0x73   : > { %p1445_p4 = pnand %p1444_p2, %p1438_p12 }
  0x75   : > { %1448 = shalt.err (!%p1445_p4)
}
  0x76   : > { %s2205_s30 = smov 8   ;;  %s2206_s0 = smov 128  }
  0x77   : > { %1215 = dma.hbm_to_vmem [thread:$0]  (!%p1776_p5), %s2179_s2, 512, %s370_s12, [#allocation11], %s2206_s0, %s2206_s0, %s2205_s30  }
  0x78   : > { %s1449_s22 = scalar_lea.hbm %s2181_s4, 16 }
  0x79   : > { %p1450_p6 = scmp.ne.s32.totalorder %s2181_s4, %s1449_s22  ;;  %p1456_p1 = scmp.lt.u32.totalorder %s1449_s22, %s2181_s4 }
  0x7b   : > { %p1452_p8 = pnand %p1450_p6, %p1792_p7 }
  0x7d   : > { %p1453_p9 = pneg %p1452_p8 }
  0x7f   : > { %p1458_p3 = pnand %p1456_p1, %p1453_p9 }
  0x81   : > { %1461 = shalt.err (!%p1458_p3)
}
  0x82   : > { %s1462_s9 = scalar_lea.vmem %s399_s26, 16  ;;  %s1469_s12 = scalar_lea.vmem %s399_s26, 32 }
  0x83   : > { %p1463_p10 = scmp.ne.s32.totalorder %s399_s26, %s1462_s9  ;;  %p1470_p13 = scmp.lt.s32.totalorder %s399_s26, %s399_s26 }
  0x84   : > { %p1471_p0 = scmp.lt.s32.totalorder %s1469_s12, %s1462_s9 }
  0x85   : > { %p1465_p11 = pnand %p1463_p10, %p1792_p7 }
  0x86   : > { %p1472_p2 = por %p1471_p0, %p1470_p13 }
  0x87   : > { %p1466_p12 = pneg %p1465_p11 }
  0x89   : > { %p1473_p4 = pnand %p1472_p2, %p1466_p12 }
  0x8b   : > { %1476 = shalt.err (!%p1473_p4)
}
  0x8c   : > { %1221 = dma.hbm_to_vmem [thread:$0]  (!%p1776_p5), %s2181_s4, 16, %s399_s26, [#allocation14]  }
  0x8d   : > { %s1670_s28 = smov [#allocation16]   ;;  %s1477_s11 = scalar_lea.hbm %s2183_s6, 128 }
  0x8e   : > { %s418_s22 = sshll.u32 %s1670_s28, 4  ;;  %p1478_p6 = scmp.ne.s32.totalorder %s2183_s6, %s1477_s11  ;;  %s419_s22 = int_to_ptr.vmem [resolvable:$true] %s418_s22 }
  0x8f   : > { %p1484_p1 = scmp.lt.u32.totalorder %s1477_s11, %s2183_s6 }
  0x90   : > { %p1480_p8 = pnand %p1478_p6, %p1792_p7 }
  0x92   : > { %p1481_p9 = pneg %p1480_p8 }
  0x94   : > { %p1486_p3 = pnand %p1484_p1, %p1481_p9 }
  0x96   : > { %1489 = shalt.err (!%p1486_p3)
}
  0x97   : > { %s1490_s26 = scalar_lea.vmem %s419_s22, 128  ;;  %p1498_p13 = scmp.lt.s32.totalorder %s419_s22, %s419_s22 }
  0x98   : > { %p1491_p10 = scmp.ne.s32.totalorder %s419_s22, %s1490_s26  ;;  %p1499_p0 = scmp.lt.s32.totalorder %s1490_s26, %s1490_s26 }
  0x9a   : > { %p1493_p11 = pnand %p1491_p10, %p1792_p7  ;;  %p1500_p2 = por %p1499_p0, %p1498_p13 }
  0x9c   : > { %p1494_p12 = pneg %p1493_p11 }
  0x9e   : > { %p1501_p4 = pnand %p1500_p2, %p1494_p12 }
  0xa0   : > { %1504 = shalt.err (!%p1501_p4)
}
  0xa1   : > { %1224 = dma.hbm_to_vmem [thread:$0]  (!%p1776_p5), %s2183_s6, 128, %s419_s22, [#allocation17]  }
  0xa2   : > { %s36_s21 = sadd.s32 1, %s1657_s17  ;;  %s225_s25 = sadd.s32 1, %s1649_s15 }
  0xa3   : > { %p37_p7 = scmp.ge.s32.totalorder %s36_s21, 10  ;;  %p232_p6 = scmp.ne.s32.totalorder %s1649_s15, %s1645_s14 }
  0xa4   : > { %p233_p8 = scmp.eq.s32.totalorder %s1661_s18, 0  ;;  %p238_p9 = scmp.ne.s32.totalorder %s1645_s14, %s1641_s13 }
  0xa5   : > { %s2228_s21 = smov (%p37_p7, %s36_s21), 0  ;;  %p2208_p3 = scmp.eq.s32.totalorder %s1763_s19, 0 }
  0xa6   : > { %p1919_p1 = por %p233_p8, %p232_p6  ;;  %s220_s22 = ssub.s32 %s1657_s17, %s2228_s21 }
  0xa7   : > { %p1925_p10 = por %p2208_p3, %p238_p9  ;;  %p1235_p5 = scmp.lt.s32.totalorder %s1661_s18, 10 }
  0xa8   : > { %p223_p11 = scmp.eq.s32.totalorder %s220_s22, 0  ;;  %s429_s29 = sand.u32 1, %s1661_s18  }
  0xa9   : > { %s431_s24 = sand.u32 1, %s1649_s15   ;;  %s1127_s27 = sshll.u32 %s1657_s17, 9 }
  0xaa   : > { %s1935_s11 = scalar_select %p223_p11, %s1649_s15, %s225_s25  }
  0xab   : > { %s1101_s13 = sshll.u32 %s431_s24, 5  ;;  %s1941_s26 = scalar_lea.hbm %s2184_s7, %s1127_s27 }
  0xac   : > { %s433_s1 = scalar_lea.vmem [#allocation18], %s1101_s13  ;;  %p1945_p12 = pnand %p1235_p5, %p1919_p1 }
  0xad   : > { %s441_s10 = sshll.u32 %s433_s1, 4  ;;  %s1951_s25 = scalar_lea.sflag [#allocation8], %s429_s29  ;;  %s1949_s10 = int_to_ptr.vmem [resolvable:$true] %s441_s10 }
  0xae   : > { %s1505_s24 = scalar_lea.hbm %s1941_s26, 512  ;;  %p1507_p0 = pneg %p1945_p12 }
  0xaf   : > { %p1506_p13 = scmp.ne.s32.totalorder %s1941_s26, %s1505_s24  ;;  %s1510_s27 = scalar_lea.hbm %s2184_s7, 5120 }
  0xb0   : > { %p1511_p7 = scmp.lt.u32.totalorder %s1941_s26, %s2184_s7  ;;  %p1512_p6 = scmp.lt.u32.totalorder %s1510_s27, %s1505_s24 }
  0xb1   : > { %p1508_p2 = pnand %p1507_p0, %p1506_p13  ;;  %p1514_p9 = scmp.lt.u32.totalorder %s1505_s24, %s1941_s26 }
  0xb2   : > { %p1513_p8 = por %p1512_p6, %p1511_p7 }
  0xb3   : > { %p1509_p4 = pneg %p1508_p2 }
  0xb4   : > { %p1515_p1 = por %p1514_p9, %p1513_p8 }
  0xb6   : > { %p1516_p3 = pnand %p1515_p1, %p1509_p4 }
  0xb8   : > { %1519 = shalt.err (!%p1516_p3)
}
  0xb9   : > { %s1520_s29 = scalar_lea.vmem %s1949_s10, 512  ;;  %s1671_s1 = smov [#allocation18]  }
  0xba   : > { %p1521_p5 = scmp.ne.s32.totalorder %s1949_s10, %s1520_s29  ;;  %s1525_s13 = sshll.u32 %s1671_s1, 4  ;;  %s1526_s13 = int_to_ptr.vmem [resolvable:$false] %s1525_s13 }
  0xbb   : > { %s1527_s23 = scalar_lea.vmem %s1526_s13, 1024  ;;  %p1528_p2 = scmp.lt.s32.totalorder %s1949_s10, %s1526_s13 }
  0xbc   : > { %p1523_p11 = pnand %p1521_p5, %p1507_p0  ;;  %p1529_p7 = scmp.lt.s32.totalorder %s1527_s23, %s1520_s29 }
  0xbe   : > { %p1524_p13 = pneg %p1523_p11  ;;  %p1530_p6 = por %p1529_p7, %p1528_p2 }
  0xc0   : > { %p1531_p8 = pnand %p1530_p6, %p1524_p13 }
  0xc2   : > { %1534 = shalt.err (!%p1531_p8)
}
  0xc3   : > { %1228 = dma.hbm_to_vmem [thread:$0]  (!%p1945_p12), %s1941_s26, 512, %s1949_s10, %s1951_s25, %s2206_s0, %s2206_s0, %s2205_s30  }
  0xc4   : > { %p2211_p0 = scmp.ne.s32.totalorder %s2200_s20, 0 }
  0xc5   : > { %p2212_p4 = scmp.eq.s32.totalorder (!%p2211_p0), %s1763_s19, 0 }
  0xc6   : > { %462 = sbr.rel (%p2211_p0) target bundleno = 590 (0x24e), region = 56 }
  0xcd   : > { %1612 = dma.done.wait (%p2212_p4), [#allocation8], 128   ;;  %p2213_p9 = pmov %p2212_p4 }
  0xce   : > { %p2214_p1 = pmov %p2212_p4 }
  0xcf   : > { %1614 = vsyncadd (%p2213_p9), [#allocation8], 4294967168 }
  0xd0   : > { %1616 = dma.done.wait (%p2214_p1), [#allocation11], 1024   ;;  %p2215_p3 = pmov %p2214_p1 }
  0xd1   : > { %p2216_p5 = pmov %p2214_p1 }
  0xd2   : > { %1618 = vsyncadd (%p2215_p3), [#allocation11], 4294966272 }
  0xd3   : > { %1620 = dma.done.wait (%p2216_p5), [#allocation14], 32   ;;  %p2217_p12 = pmov %p2214_p1 }
  0xd4   : > { %p2218_p11 = pmov %p2214_p1 }
  0xd5   : > { %1622 = vsyncadd (%p2217_p12), [#allocation14], 4294967264 }
  0xd6   : > { %1624 = dma.done.wait (%p2218_p11), [#allocation17], 128   ;;  %p2219_p13 = pmov %p2214_p1 }
  0xd7   : > { %s488_s20 = sand.u32 1, %s1763_s19   ;;  %s490_s30 = sand.u32 1, %s1645_s14  }
  0xd8   : > { %1626 = vsyncadd (%p2219_p13), [#allocation17], 4294967168  ;;  %s1111_s0 = sshll.u32 %s490_s30, 5  ;;  %s489_s26 = scalar_lea.sflag [#allocation8], %s488_s20 }
  0xd9   : > { %s2002_s10 = scalar_lea.vmem [#allocation18], %s1111_s0 }
  0xda   : > { %1628 = dma.done.wait (%p1925_p10), %s489_s26, 512  }
  0xdb   : > { %1630 = vsyncadd (%p1925_p10), %s489_s26, 4294966784  ;;  %p538_p2 = scmp.lt.s32.totalorder %s1653_s16, 9  ;;  %p1112_p7 = scmp.ne.s32.totalorder %s1653_s16, 0 }
  0xdc   : > { %v2017_v0 = vld [vmem:[#allocation10] sm:$0xff] (!%p1112_p7)  ;;  %v2019_v1 = vld [vmem:[#allocation10 + $0x8] sm:$0xff] (!%p1112_p7)  ;;  %v1672_v3 = vmov (!%p1112_p7), 0.0|0.0   ;;  %v2025_v7 = vld [vmem:[#allocation10 + $0x10] sm:$0xff] (!%p1112_p7)  ;;  %vm1673_vm0 = vmmov (!%p1112_p7), 0   ;;  %v1674_v12 = vmov (!%p1112_p7), 0.0  }
  0xdd   : > { %s2010_s22 = scalar_select %p538_p2, %s1653_s16, 9 }
  0xde   : > { %547 = sbr.rel (%p1112_p7) target bundleno = 489 (0x1e9), region = 88  ;;  %v552_v2 = vld [vmem:[#allocation12] sm:$0xff] (!%p1112_p7)  ;;  %1166 = vmatprep.subr.bf16.mxu1 (!%p1112_p7), %v1672_v3  ;;  %1160 = vmatprep.subr.bf16.mxu0 (!%p1112_p7), %v1672_v3  ;;  %v553_v4 = vld [vmem:[#allocation12 + $0x8] sm:$0xff] (!%p1112_p7)  ;;  %v1167_v6 = vpack.c.bf16 (!%p1112_p7), %v2019_v1, %v2017_v0  ;;  %v2027_v8 = vld [vmem:[#allocation10 + $0x18] sm:$0xff] (!%p1112_p7)  ;;  %vm614_vm1 = vcmask (!%p1112_p7), 261120   ;;  %v803_v35 = vmul.f32 (!%p1112_p7), %v2017_v0, %v2017_v0  ;;  %v804_v36 = vmul.f32 (!%p1112_p7), %v2019_v1, %v2019_v1 }
  0xdf   : > { %s543_s27 = scalar_lea.vmem %s2185_s8, %s2010_s22  ;;  %v556_v5 = vadd.f32 (!%p1112_p7), 1.0, %v552_v2  ;;  %v557_v9 = vadd.f32 (!%p1112_p7), 1.0, %v553_v4  ;;  %v554_v10 = vld [vmem:[#allocation12 + $0x10] sm:$0xff] (!%p1112_p7)  ;;  %v555_v11 = vld [vmem:[#allocation12 + $0x18] sm:$0xff] (!%p1112_p7)  ;;  %1157 = vmatprep.mubr.msk.f32.mxu1 (!%p1112_p7), %vm1673_vm0, %v1674_v12  ;;  %1146 = vmatprep.mubr.msk.f32.mxu0 (!%p1112_p7), %vm1673_vm0, %v1674_v12  ;;  %v1170_v15 = vpack.c.bf16 (!%p1112_p7), %v2027_v8, %v2025_v7  ;;  %v805_v37 = vmul.f32 (!%p1112_p7), %v2025_v7, %v2025_v7 }
  0xe0   : > { %1168 = vmatpush3.bf16.msra.mxu1 (!%p1112_p7), %v1167_v6  ;;  %v558_v14 = vadd.f32 (!%p1112_p7), 1.0, %v554_v10  ;;  %v559_v17 = vadd.f32 (!%p1112_p7), 1.0, %v555_v11  ;;  %v2032_v20 = vld [vmem:[#allocation7] sm:$0xff] (!%p1112_p7)  ;;  %v806_v40 = vmul.f32 (!%p1112_p7), %v2027_v8, %v2027_v8  ;;  %v807_v42 = vmul.f32 (!%p1112_p7), 0.5, %v803_v35 }
  0xe1   : > { %v560_v13 = vmul.f32 (!%p1112_p7), 1.442695, %v556_v5  ;;  %v562_v16 = vmul.f32 (!%p1112_p7), 1.442695, %v557_v9  ;;  %1169 = vmatprep.subr.bf16.mxu1 (!%p1112_p7), %v1672_v3  ;;  %v808_v43 = vmul.f32 (!%p1112_p7), 0.5, %v804_v36  ;;  %v809_v46 = vmul.f32 (!%p1112_p7), 0.5, %v805_v37 }
  0xe2   : > { %v564_v18 = vmul.f32 (!%p1112_p7), 1.442695, %v558_v14  ;;  %v566_v19 = vmul.f32 (!%p1112_p7), 1.442695, %v559_v17  ;;  %v810_v47 = vmul.f32 (!%p1112_p7), 0.5, %v806_v40 }
  0xe3   : > { %1307 = vpow2.f32 (!%p1112_p7), %v560_v13  ;;  %v600_v37 = vld [vmem:[#allocation13] sm:$0x1] (!%p1112_p7) }
  0xe4   : > { %1309 = vpow2.f32 (!%p1112_p7), %v562_v16  ;;  %1171 = vmatpush3.bf16.msra.mxu1 (!%p1112_p7), %v1170_v15  ;;  %v836_v40 = vmul.f32 (!%p1112_p7), %v600_v37, %v600_v37 }
  0xe5   : > { %1311 = vpow2.f32 %v564_v18 }
  0xe6   : > { %1313 = vpow2.f32 %v566_v19 }
  0xe7   : > { %1158 = vmatmul.mubr.msk.f32.vlgmr.msra.gmra.mrb[0].mxu1 %vm614_vm1, %v2032_v20 }
  0xed   : > { %v1308_v21 = vpop.eup %1307 }
  0xee   : > { %v1310_v22 = vpop.eup %1309  ;;  %v568_v23 = vadd.f32 1e-08, %v1308_v21 }
  0xef   : > { %v1312_v24 = vpop.eup %1311  ;;  %v2036_v25 = vadd.f32 1e-08, %v1310_v22 }
  0xf0   : > { %v1314_v26 = vpop.eup %1313  ;;  %v1115_v27 = vadd.f32 -1.0, %v568_v23  ;;  %1315 = vlog2.f32 %v568_v23  ;;  %v2041_v31 = vadd.f32 1e-08, %v1312_v24  ;;  %vm574_vm2 = vcmp.eq.f32.partialorder %v568_v23, inf }
  0xf1   : > { %v1116_v28 = vadd.f32 -1.0, %v2036_v25  ;;  %1317 = vlog2.f32 %v2036_v25  ;;  %v2043_v32 = vadd.f32 1e-08, %v1314_v26  ;;  %vm576_vm3 = vcmp.eq.f32.partialorder %v568_v23, 0.0 }
  0xf2   : > { %v790_v29 = vmul.f32 0.5, %v1115_v27  ;;  %1319 = vrsqrt.f32 %v568_v23  ;;  %v1117_v33 = vadd.f32 -1.0, %v2041_v31  ;;  %v577_v50 = vand.u32 2147483648, %v568_v23 }
  0xf3   : > { %v791_v30 = vmul.f32 0.5, %v1116_v28  ;;  %1321 = vrsqrt.f32 %v2036_v25  ;;  %v1118_v34 = vadd.f32 -1.0, %v2043_v32  ;;  %vm581_vm4 = vcmp.eq.f32.partialorder %v2036_v25, inf }
  0xf4   : > { %794 = vst [vmem:[#allocation3] sm:$0xff] %v790_v29  ;;  %1323 = vlog2.f32 %v2041_v31  ;;  %v792_v38 = vmul.f32 0.5, %v1117_v33  ;;  %vm583_vm5 = vcmp.eq.f32.partialorder %v2036_v25, 0.0  ;;  %v584_v54 = vand.u32 2147483648, %v2036_v25  ;;  %v601_v29 = vld [vmem:[#allocation15] sm:$0x1] }
  0xf5   : > { %795 = vst [vmem:[#allocation3 + $0x8] sm:$0xff] %v791_v30  ;;  %1325 = vlog2.f32 %v2043_v32  ;;  %v793_v39 = vmul.f32 0.5, %v1118_v34  ;;  %vm588_vm6 = vcmp.eq.f32.partialorder %v2041_v31, inf  ;;  %vm590_vm7 = vcmp.eq.f32.partialorder %v2041_v31, 0.0 }
  0xf6   : > { %1327 = vrsqrt.f32 %v2041_v31  ;;  %796 = vst [vmem:[#allocation3 + $0x10] sm:$0xff] %v792_v38  ;;  %v591_v60 = vand.u32 2147483648, %v2041_v31  ;;  %vm595_vm8 = vcmp.eq.f32.partialorder %v2043_v32, inf  ;;  %v598_v11 = vand.u32 2147483648, %v2043_v32 }
  0xf7   : > { %1329 = vrsqrt.f32 %v2043_v32  ;;  %797 = vst [vmem:[#allocation3 + $0x18] sm:$0xff] %v793_v39  ;;  %vm597_vm9 = vcmp.eq.f32.partialorder %v2043_v32, 0.0  ;;  %v602_v30 = vadd.f32 1.0, %v601_v29 }
  0xfa   : > { %v1316_v41 = vpop.eup %1315 }
  0xfb   : > { %v1318_v44 = vpop.eup %1317  ;;  %v812_v45 = vmul.f32 0.6931472, %v1316_v41 }
  0xfc   : > { %v1320_v48 = vpop.eup %1319  ;;  %v814_v49 = vmul.f32 0.6931472, %v1318_v44 }
  0xfd   : > { %v1322_v51 = vpop.eup %1321  ;;  %v819_v52 = vmul.f32 0.5, %v812_v45  ;;  %v573_v53 = vmul.f32 %v1320_v48, %v568_v23 }
  0xfe   : > { %v820_v55 = vmul.f32 0.5, %v814_v49  ;;  %v580_v56 = vmul.f32 %v1322_v51, %v2036_v25  ;;  %v1324_v57 = vpop.eup %1323 }
  0xff   : > { %v823_v58 = vsub.f32 %v807_v42, %v819_v52  ;;  %v575_v59 = vsel %vm574_vm2, %v568_v23, %v573_v53  ;;  %v1326_v61 = vpop.eup %1325  ;;  %v816_v4 = vmul.f32 0.6931472, %v1324_v57  ;;  %v837_v42 = vmul.f32 0.5, %v836_v40 }
 0x100   : > { %v824_v62 = vsub.f32 %v808_v43, %v820_v55  ;;  %v578_v63 = vsel %vm576_vm3, %v577_v50, %v575_v59  ;;  %v582_v2 = vsel %vm581_vm4, %v2036_v25, %v580_v56  ;;  %v1328_v5 = vpop.eup %1327  ;;  %v818_v10 = vmul.f32 0.6931472, %v1326_v61  ;;  %v758_v59 = vld [vmem:[%s2182_s5] sm:$0xff] }
 0x101   : > { %v585_v6 = vsel %vm583_vm5, %v584_v54, %v582_v2  ;;  %v778_v9 = vmul.f32 %v578_v63, %v2017_v0  ;;  %v1330_v12 = vpop.eup %1329  ;;  %v821_v16 = vmul.f32 0.5, %v816_v4  ;;  %v587_v18 = vmul.f32 %v1328_v5, %v2041_v31 }
 0x102   : > { %v827_v13 = vadd.f32 %v824_v62, %v823_v58  ;;  %v1161_v14 = vpack.c.bf16 %v585_v6, %v578_v63  ;;  %v779_v15 = vmul.f32 %v585_v6, %v2019_v1  ;;  %v822_v17 = vmul.f32 0.5, %v818_v10  ;;  %v768_v63 = vld [vmem:[#allocation16] sm:$0xff] }
 0x103   : > { %782 = vst [vmem:[#allocation2] sm:$0xff] %v778_v9  ;;  %v594_v19 = vmul.f32 %v1330_v12, %v2043_v32  ;;  %v825_v0 = vsub.f32 %v809_v46, %v821_v16  ;;  %v589_v22 = vsel %vm588_vm6, %v2041_v31, %v587_v18  ;;  %v762_v56 = vlaneseq }
 0x104   : > { %1162 = vmatpush3.bf16.msra.mxu0 %v1161_v14  ;;  %783 = vst [vmem:[#allocation2 + $0x8] sm:$0xff] %v779_v15  ;;  %v826_v21 = vsub.f32 %v810_v47, %v822_v17  ;;  %v592_v24 = vsel %vm590_vm7, %v591_v60, %v589_v22 }
 0x105   : > { %1163 = vmatprep.subr.bf16.mxu0 %v1672_v3  ;;  %v596_v1 = vsel %vm595_vm8, %v2043_v32, %v594_v19  ;;  %v828_v23 = vadd.f32 %v827_v13, %v825_v0  ;;  %v780_v27 = vmul.f32 %v592_v24, %v2025_v7  ;;  %v603_v32 = vmul.f32 1.442695, %v602_v30 }
 0x106   : > { %v599_v25 = vsel %vm597_vm9, %v598_v11, %v596_v1  ;;  %v763_v57 = vshrl.u32 %v762_v56, 7 }
 0x107   : > { %v1164_v26 = vpack.c.bf16 %v599_v25, %v592_v24  ;;  %v781_v28 = vmul.f32 %v599_v25, %v2027_v8  ;;  %v829_v3 = vadd.f32 %v828_v23, %v826_v21  ;;  %784 = vst [vmem:[#allocation2 + $0x10] sm:$0xff] %v780_v27  ;;  %1331 = vpow2.f32 %v603_v32 }
 0x108   : > { %v764_v58 = vsub.s32 0, %v763_v57 }
 0x109   : > { %1165 = vmatpush3.bf16.msra.mxu0 %v1164_v26  ;;  %785 = vst [vmem:[#allocation2 + $0x18] sm:$0xff] %v781_v28  ;;  %v830_v34 = vrot.slane %v829_v3, 4 }
 0x10a   : > { %v765_v4 = vrot.slane %v600_v37, %v764_v58 }
 0x10b   : > { %v831_v35 = vadd.f32 %v830_v34, %v829_v3 }
 0x10c   : > { %1147 = vmatmul.mubr.msk.f32.vlgmr.msra.gmra.mrb[0].mxu0 %vm614_vm1, %v2032_v20 }
 0x10d   : > { %v832_v7 = vrot.slane %v831_v35, 2 }
 0x10f   : > { %v833_v36 = vadd.f32 %v832_v7, %v831_v35 }
 0x111   : > { %v1332_v33 = vpop.eup %1331  ;;  %v834_v39 = vrot.slane %v833_v36, 1 }
 0x112   : > { %v605_v31 = vadd.f32 1e-08, %v1332_v33 }
 0x113   : > { %v835_v20 = vadd.f32 %v834_v39, %v833_v36 }
 0x114   : > { %1333 = vrsqrt.f32 %v605_v31  ;;  %vm608_vm10 = vcmp.eq.f32.partialorder %v605_v31, inf  ;;  %v611_v44 = vand.u32 2147483648, %v605_v31  ;;  %vm610_vm11 = vcmp.eq.f32.partialorder %v605_v31, 0.0 }
 0x115   : > { %1335 = vlog2.f32 %v605_v31  ;;  %v838_v46 = vadd.f32 %v837_v42, %v835_v20  ;;  %v1119_v48 = vadd.f32 -1.0, %v605_v31 }
 0x117   : > { %v801_v52 = vmul.f32 0.5, %v1119_v48 }
 0x119   : > { %802 = vst [vmem:[#allocation5] sm:$0x1] %v801_v52 }
 0x11e   : > { %v1334_v8 = vpop.eup %1333 }
 0x11f   : > { %v607_v38 = vmul.f32 %v1334_v8, %v605_v31  ;;  %v1336_v41 = vpop.eup %1335 }
 0x120   : > { %v840_v43 = vmul.f32 0.6931472, %v1336_v41 }
 0x121   : > { %v609_v45 = vsel %vm608_vm10, %v605_v31, %v607_v38 }
 0x122   : > { %v841_v47 = vmul.f32 0.5, %v840_v43  ;;  %v612_v50 = vsel %vm610_vm11, %v611_v44, %v609_v45 }
 0x123   : > { %v798_v51 = vmul.f32 %v612_v50, %v600_v37  ;;  %v773_v61 = vrot.slane %v612_v50, %v764_v58 }
 0x124   : > { %v842_v49 = vsub.f32 %v838_v46, %v841_v47 }
 0x125   : > { %799 = vst [vmem:[#allocation4] sm:$0x1] %v798_v51  ;;  %v775_v9 = vmul.f32 %v773_v61, %v768_v63 }
 0x126   : > { %v843_v53 = vmul.f32 10.0, %v842_v49 }
 0x128   : > { %844 = vst [vmem:[#allocation6] sm:$0x1] %v843_v53 }
 0x1ba   : > { %v754_v54 = vpop.f32.mrb[0].mxu1 }
 0x1bb   : > { %v1159_v55 = vpop.f32.mrb[1].mxu1  ;;  %v755_v60 = vadd.f32 1e-08, %v754_v54 }
 0x1df   : > { %v684_v62 = vpop.f32.mrb[0].mxu0 }
 0x1e0   : > { %v759_v2 = vmul.f32 %v758_v59, %v684_v62  ;;  %v1148_v5 = vpop.f32.mrb[1].mxu0 }
 0x1e2   : > { %v760_v6 = vadd.f32 %v759_v2, %v755_v60 }
 0x1e4   : > { %v767_v10 = vadd.f32 %v765_v4, %v760_v6 }
 0x1e6   : > { %v776_v11 = vadd.f32 %v775_v9, %v767_v10 }
 0x1e8   : > { %777 = vst [vmem:[#allocation19] sm:$0xff] %v776_v11 }
 0x1e9 PF: > { %v845_v12 = vld [vmem:[%s2002_s10] sm:$0xff]  ;;  %v846_v13 = vld [vmem:[%s2002_s10 + $0x8] sm:$0xff]  ;;  %v847_v14 = vld [vmem:[%s2002_s10 + $0x10] sm:$0xff]  ;;  %p1120_p10 = scmp.ne.s32.totalorder %s1653_s16, 9 }
 0x1ea   : > { %v848_v15 = vld [vmem:[%s2002_s10 + $0x18] sm:$0xff]  ;;  %v850_v16 = vld [vmem:[#allocation2] sm:$0xff]  ;;  %v862_v17 = vmul.f32 %v845_v12, %v845_v12  ;;  %v863_v18 = vmul.f32 %v846_v13, %v846_v13  ;;  %v864_v19 = vmul.f32 %v847_v14, %v847_v14  ;;  %v853_v22 = vld [vmem:[#allocation2 + $0x18] sm:$0xff] }
 0x1eb   : > { %v851_v0 = vld [vmem:[#allocation2 + $0x8] sm:$0xff]  ;;  %v852_v21 = vld [vmem:[#allocation2 + $0x10] sm:$0xff]  ;;  %v854_v1 = vmul.f32 %v850_v16, %v845_v12  ;;  %v865_v23 = vmul.f32 %v848_v15, %v848_v15  ;;  %v858_v26 = vld [vmem:[#allocation3] sm:$0xff]  ;;  %v857_v3 = vmul.f32 %v853_v22, %v848_v15 }
 0x1ec   : > { %v855_v24 = vmul.f32 %v851_v0, %v846_v13  ;;  %v856_v25 = vmul.f32 %v852_v21, %v847_v14  ;;  %v859_v27 = vld [vmem:[#allocation3 + $0x8] sm:$0xff]  ;;  %v860_v28 = vld [vmem:[#allocation3 + $0x10] sm:$0xff]  ;;  %v861_v29 = vld [vmem:[#allocation3 + $0x18] sm:$0xff]  ;;  %v866_v30 = vmul.f32 %v862_v17, %v858_v26 }
 0x1ed   : > { %v867_v32 = vmul.f32 %v863_v18, %v859_v27  ;;  %v868_v33 = vmul.f32 %v864_v19, %v860_v28  ;;  %v869_v31 = vmul.f32 %v865_v23, %v861_v29  ;;  %v849_v41 = vld [vmem:[%s543_s27] sm:$0x1]  ;;  %v883_v42 = vld [vmem:[#allocation4] sm:$0x1]  ;;  %v886_v45 = vld [vmem:[#allocation5] sm:$0x1] }
 0x1ee   : > { %v870_v34 = vadd.f32 %v866_v30, %v854_v1  ;;  %v887_v44 = vmul.f32 %v849_v41, %v849_v41  ;;  %v884_v47 = vmul.f32 %v883_v42, %v849_v41  ;;  %v890_v51 = vld [vmem:[#allocation6] sm:$0x1] }
 0x1ef   : > { %v871_v35 = vadd.f32 %v867_v32, %v855_v24  ;;  %v872_v7 = vadd.f32 %v868_v33, %v856_v25  ;;  %v873_v36 = vadd.f32 %v869_v31, %v857_v3 }
 0x1f0   : > { %v888_v49 = vmul.f32 %v887_v44, %v886_v45 }
 0x1f1   : > { %v874_v8 = vadd.f32 %v871_v35, %v870_v34 }
 0x1f3   : > { %v875_v37 = vadd.f32 %v874_v8, %v872_v7 }
 0x1f5   : > { %v876_v38 = vadd.f32 %v875_v37, %v873_v36 }
 0x1f7   : > { %v877_v39 = vrot.slane %v876_v38, 4 }
 0x1f9   : > { %v878_v40 = vadd.f32 %v877_v39, %v876_v38 }
 0x1fb   : > { %v879_v20 = vrot.slane %v878_v40, 2 }
 0x1fd   : > { %v880_v43 = vadd.f32 %v879_v20, %v878_v40 }
 0x1ff   : > { %v881_v46 = vrot.slane %v880_v43, 1 }
 0x201   : > { %v882_v48 = vadd.f32 %v881_v46, %v880_v43 }
 0x203   : > { %v885_v50 = vadd.f32 %v884_v47, %v882_v48  ;;  %896 = sbr.rel (%p1120_p10) target bundleno = 530 (0x212), region = 92 }
 0x205   : > { %v889_v52 = vadd.f32 %v888_v49, %v885_v50 }
 0x207   : > { %v891_v53 = vadd.f32 %v890_v51, %v889_v52 }
 0x209   : > { %892 = vst [vmem:[#allocation6] sm:$0x1] %v891_v53 }
 0x210   : > { %v897_v54 = vld [vmem:[#allocation6] sm:$0x1] }
 0x211   : > { %898 = vst [vmem:[#allocation20] sm:$0x1] %v897_v54 }
 0x212 PF: > { %p1242_p6 = scmp.eq.s32.totalorder %s1763_s19, 9  ;;  %s1675_s1 = smov [#allocation19]  }
 0x213   : > { %s908_s13 = sshll.u32 %s1675_s1, 4  ;;  %s1676_s23 = smov [#allocation20]   ;;  %s909_s13 = int_to_ptr.vmem [resolvable:$true] %s908_s13 }
 0x214   : > { %s921_s20 = sshll.u32 %s1676_s23, 4  ;;  %s1535_s30 = scalar_lea.vmem %s909_s13, 128  ;;  %s2107_s20 = int_to_ptr.vmem [resolvable:$true] %s921_s20 }
 0x215   : > { %p1536_p8 = scmp.ne.s32.totalorder %s909_s13, %s1535_s30  ;;  %p1542_p9 = scmp.lt.s32.totalorder %s909_s13, %s909_s13 }
 0x216   : > { %p1543_p1 = scmp.lt.s32.totalorder %s1535_s30, %s1535_s30 }
 0x217   : > { %p1537_p0 = pnand %p1536_p8, %p1242_p6 }
 0x218   : > { %p1544_p3 = por %p1543_p1, %p1542_p9 }
 0x219   : > { %p1538_p4 = pneg %p1537_p0 }
 0x21b   : > { %p1545_p5 = pnand %p1544_p3, %p1538_p4 }
 0x21d   : > { %1548 = shalt.err (!%p1545_p5)
}
 0x21e   : > { %s2220_s26 = sld [smem:[#allocation31_spill]] }
 0x224   : > { %s1549_s10 = scalar_lea.hbm %s2220_s26, 128 }
 0x225   : > { %p1550_p12 = scmp.ne.s32.totalorder %s2220_s26, %s1549_s10  ;;  %p1555_p2 = scmp.lt.u32.totalorder %s1549_s10, %s2220_s26 }
 0x227   : > { %p1551_p11 = pnand %p1550_p12, %p1242_p6 }
 0x229   : > { %p1552_p13 = pneg %p1551_p11 }
 0x22b   : > { %p1557_p7 = pnand %p1555_p2, %p1552_p13 }
 0x22d   : > { %1560 = shalt.err (!%p1557_p7)
}
 0x22e   : > { %1199 = dma.vmem_to_hbm [thread:$0]  (%p1242_p6), %s909_s13, 128, %s2220_s26, [#allocation9]  }
 0x22f   : > { %s1561_s12 = scalar_lea.vmem %s2107_s20, 16  ;;  %s1567_s29 = scalar_lea.vmem %s2107_s20, 32 }
 0x230   : > { %p1562_p10 = scmp.ne.s32.totalorder %s2107_s20, %s1561_s12  ;;  %p1568_p4 = scmp.lt.s32.totalorder %s2107_s20, %s2107_s20 }
 0x231   : > { %p1569_p9 = scmp.lt.s32.totalorder %s1567_s29, %s1561_s12 }
 0x232   : > { %p1563_p8 = pnand %p1562_p10, %p1242_p6 }
 0x233   : > { %p1570_p1 = por %p1569_p9, %p1568_p4 }
 0x234   : > { %p1564_p0 = pneg %p1563_p8 }
 0x236   : > { %p1571_p3 = pnand %p1570_p1, %p1564_p0 }
 0x238   : > { %1574 = shalt.err (!%p1571_p3)
}
 0x239   : > { %s2221_s30 = sld [smem:[#allocation32_spill]] }
 0x23f   : > { %s1575_s16 = scalar_lea.hbm %s2221_s30, 16 }
 0x240   : > { %p1576_p5 = scmp.ne.s32.totalorder %s2221_s30, %s1575_s16  ;;  %p1581_p13 = scmp.lt.u32.totalorder %s1575_s16, %s2221_s30 }
 0x242   : > { %p1577_p12 = pnand %p1576_p5, %p1242_p6 }
 0x244   : > { %p1578_p11 = pneg %p1577_p12 }
 0x246   : > { %p1583_p2 = pnand %p1581_p13, %p1578_p11 }
 0x248   : > { %1586 = shalt.err (!%p1583_p2)
}
 0x249   : > { %1201 = dma.vmem_to_hbm [thread:$0]  (%p1242_p6), %s2107_s20, 16, %s2221_s30, [#allocation21]  }
 0x24a   : > { %1632 = dma.done.wait (%p1242_p6), [#allocation9], 128  }
 0x24b   : > { %1634 = vsyncadd (%p1242_p6), [#allocation9], 4294967168 }
 0x24c   : > { %1636 = dma.done.wait (%p1242_p6), [#allocation21], 16  }
 0x24d   : > { %1638 = vsyncadd (%p1242_p6), [#allocation21], 4294967280 }
 0x24e PF: > { %s27_s18 = sadd.s32 1, %s1661_s18   ;;  %s2222_s13 = smov %s1645_s14 }
 0x24f   : > { %p24_p7 = scmp.ge.s32.totalorder %s27_s18, 12   ;;  %s2223_s14 = smov %s1649_s15 }
 0x250   : > { %s2224_s15 = smov %s1935_s11  ;;  %s2225_s16 = smov %s1657_s17 }
 0x251   : > { %s2226_s17 = smov %s2228_s21  ;;  %26 = sbr.rel (!%p24_p7) target bundleno = 13 (0xd), region = 145 }
 0x258   :  { %938 = vsyncpa [#allocation8], 1 }
 0x259   :  { %940 = vsyncpa [#allocation8 + $0x1], 1 }
 0x25a   :  { %941 = vsyncpa [#allocation11], 1 }
 0x25b   :  { %942 = vsyncpa [#allocation14], 1 }
 0x25c   :  { %943 = vsyncpa [#allocation17], 1 }
 0x25d   :  { %944 = vsyncpa [#allocation9], 1 }
 0x25e   :  { %946 = vsyncpa [#allocation9 + $0x1], 1 }
 0x25f   :  { %947 = vsyncpa [#allocation21], 1 }

</bundles_post_ra>
